<compile_context>
chip_gen: v6e
topology: v6e:2x2x1
jax: 0.10.0
libtpu: 0.0.40
codegen_flags: <defaults>
</compile_context>

<pallas_src>
import jax
import jax.numpy as jnp
from jax.experimental import pallas as pl
from jax.experimental.pallas import tpu as pltpu


def _round_up(x, m):
    return ((x + m - 1) // m) * m


def _round_down(x, m):
    return (x // m) * m


def _choose_tiles(N, I, O, dtype_bytes):
    """Row/col tiles over the (N, N) adjacency plane.

    Legality: TR % 8 == 0 or TR == N; TC % 128 == 0 or TC == N.
    Target: a few MiB of double-buffered in+out VMEM per step (streaming
    kernels hit ~85% of HBM roofline near ~1 MiB blocks), with enough grid
    steps for DMA/compute overlap and v7x 2-TC sharding.
    """
    target = 8 * 1024 * 1024  # total double-buffered IO bytes per step
    # Columns: keep the full (lane-dense) row unless N is very large.
    TC = N if N <= 4096 else 2048
    lane_cols = _round_up(TC, 128)
    per_row = (I + O) * lane_cols * dtype_bytes * 2  # in+out, double-buffered
    TR = max(8, _round_down(target // per_row, 8))
    if TR >= N:
        TR = N  # full dim is always a legal block dim
    else:
        # Keep >= ~8 row steps when the problem is big enough; per-step
        # overhead (~0.35 us) is negligible against multi-MiB DMAs.
        TR = min(TR, max(8, _round_up(pl.cdiv(N, 8), 8)))
    return TR, TC


def _gtconv_kernel(w_ref, a_ref, o_ref):
    # w_ref: (O, I) f32 scalars in SMEM; a_ref: (I, TR, TC) adjacency slab;
    # o_ref: (O, TR, TC) output slab. Pure VPU weighted sum over the tiny
    # channel axis — an MXU matmul here would run at <2% utilization and
    # force sublane-padded layouts.
    num_in = a_ref.shape[0]
    num_out = o_ref.shape[0]
    a = [a_ref[i].astype(jnp.float32) for i in range(num_in)]
    for o in range(num_out):
        acc = w_ref[o, 0] * a[0]
        for i in range(1, num_in):
            acc = acc + w_ref[o, i] * a[i]
        o_ref[o] = acc.astype(o_ref.dtype)


def gtconv_forward(weight, A, out_dtype=None):
    """weight: (O, I) f32; A: (I, N, N) stack of weighted adjacencies.

    Returns (O, N, N): out[o] = sum_i weight[o, i] * A[i].
    """
    O, I = weight.shape
    I2, N, N2 = A.shape
    assert I2 == I and N2 == N
    out_dtype = A.dtype if out_dtype is None else out_dtype

    dtype_bytes = jnp.dtype(A.dtype).itemsize
    TR, TC = _choose_tiles(N, I, O, dtype_bytes)
    grid = (pl.cdiv(N, TR), pl.cdiv(N, TC))

    # Explicit VMEM budget from the *padded* double-buffered IO blocks, with
    # headroom, clamped well below v7x's 64 MiB physical VMEM.
    dbuf_bytes = (I + O) * _round_up(TR, 8) * _round_up(TC, 128) * dtype_bytes * 2
    vmem_limit = min(max(int(2.5 * dbuf_bytes) + (2 << 20), 16 << 20), 48 << 20)

    return pl.pallas_call(
        _gtconv_kernel,
        out_shape=jax.ShapeDtypeStruct((O, N, N), out_dtype),
        grid=grid,
        in_specs=[
            # Tiny (O, I) weight as SMEM scalars: no VMEM pipeline slot.
            pl.BlockSpec(memory_space=pltpu.MemorySpace.SMEM),
            # (I, TR, TC) slab of the adjacency stack; channel axis untiled.
            pl.BlockSpec((I, TR, TC), lambda r, c: (0, r, c)),
        ],
        out_specs=pl.BlockSpec((O, TR, TC), lambda r, c: (0, r, c)),
        compiler_params=pltpu.CompilerParams(
            dimension_semantics=("parallel", "parallel"),
            vmem_limit_bytes=vmem_limit,
        ),
    )(weight.astype(jnp.float32), A)
    # TODO(synk): the MHNF pipeline consumes these as DGL graphs
    # (adj_sum_graph + edata bookkeeping); that graph construction has no
    # Pallas equivalent and is left to the caller.


if __name__ == "__main__":
    key = jax.random.PRNGKey(0)
    k_w, k_a = jax.random.split(key)

    in_channels = 4    # number of relation graphs
    out_channels = 2
    num_nodes = 16     # N x N dense adjacency per relation

    # Deterministic parameter init matching nn.init.normal_(std=0.01)
    weight = 0.01 * jax.random.normal(
        k_w, (out_channels, in_channels), dtype=jnp.float32
    )

    # Synthetic non-negative "edge weight" adjacency stack (in_channels, N, N)
    A = jax.random.uniform(
        k_a, (in_channels, num_nodes, num_nodes), dtype=jnp.float32
    )

    out = gtconv_forward(weight, A)
    out = jax.block_until_ready(out)

    # Reference check in plain JAX
    ref = jnp.einsum("oi,inm->onm", weight, A)
    assert out.shape == (out_channels, num_nodes, num_nodes)
    assert jnp.allclose(out, ref, atol=1e-6, rtol=1e-6)

    print("KERNEL_OK")
</pallas_src>

<mosaic_0001>
module attributes {stable_mosaic.version = 11 : i64} {
  func.func @_gtconv_kernel(%arg0: i32, %arg1: i32, %arg2: memref<2x4xf32, #tpu.memory_space<smem>>, %arg3: memref<4x16x16xf32, #tpu.memory_space<vmem>>, %arg4: memref<2x16x16xf32, #tpu.memory_space<vmem>>) attributes {dimension_semantics = [#tpu.dimension_semantics<parallel>, #tpu.dimension_semantics<parallel>], iteration_bounds = array<i64: 1, 1>, scalar_prefetch = 0 : i64, scratch_operands = 0 : i64, tpu.core_type = #tpu.core_type<tc>, window_params = [{transform_indices = @transform_0, window_bounds = array<i64: 2, 4>}, {transform_indices = @transform_1, window_bounds = array<i64: 4, 16, 16>}, {transform_indices = @transform_2, window_bounds = array<i64: 2, 16, 16>}]} {
    %c0 = arith.constant 0 : index
    %c0_0 = arith.constant 0 : index
    %c0_1 = arith.constant 0 : index
    %0 = vector.load %arg3[%c0, %c0_0, %c0_1] : memref<4x16x16xf32, #tpu.memory_space<vmem>>, vector<1x16x16xf32>
    %1 = vector.shape_cast %0 : vector<1x16x16xf32> to vector<16x16xf32>
    %c1 = arith.constant 1 : index
    %c0_2 = arith.constant 0 : index
    %c0_3 = arith.constant 0 : index
    %2 = vector.load %arg3[%c1, %c0_2, %c0_3] : memref<4x16x16xf32, #tpu.memory_space<vmem>>, vector<1x16x16xf32>
    %3 = vector.shape_cast %2 : vector<1x16x16xf32> to vector<16x16xf32>
    %c2 = arith.constant 2 : index
    %c0_4 = arith.constant 0 : index
    %c0_5 = arith.constant 0 : index
    %4 = vector.load %arg3[%c2, %c0_4, %c0_5] : memref<4x16x16xf32, #tpu.memory_space<vmem>>, vector<1x16x16xf32>
    %5 = vector.shape_cast %4 : vector<1x16x16xf32> to vector<16x16xf32>
    %c3 = arith.constant 3 : index
    %c0_6 = arith.constant 0 : index
    %c0_7 = arith.constant 0 : index
    %6 = vector.load %arg3[%c3, %c0_6, %c0_7] : memref<4x16x16xf32, #tpu.memory_space<vmem>>, vector<1x16x16xf32>
    %7 = vector.shape_cast %6 : vector<1x16x16xf32> to vector<16x16xf32>
    %c0_8 = arith.constant 0 : index
    %c0_9 = arith.constant 0 : index
    %8 = memref.load %arg2[%c0_8, %c0_9] : memref<2x4xf32, #tpu.memory_space<smem>>
    %9 = vector.broadcast %8 : f32 to vector<16x16xf32>
    %10 = arith.mulf %9, %1 : vector<16x16xf32>
    %c0_10 = arith.constant 0 : index
    %c1_11 = arith.constant 1 : index
    %11 = memref.load %arg2[%c0_10, %c1_11] : memref<2x4xf32, #tpu.memory_space<smem>>
    %12 = vector.broadcast %11 : f32 to vector<16x16xf32>
    %13 = arith.mulf %12, %3 : vector<16x16xf32>
    %14 = arith.addf %10, %13 : vector<16x16xf32>
    %c0_12 = arith.constant 0 : index
    %c2_13 = arith.constant 2 : index
    %15 = memref.load %arg2[%c0_12, %c2_13] : memref<2x4xf32, #tpu.memory_space<smem>>
    %16 = vector.broadcast %15 : f32 to vector<16x16xf32>
    %17 = arith.mulf %16, %5 : vector<16x16xf32>
    %18 = arith.addf %14, %17 : vector<16x16xf32>
    %c0_14 = arith.constant 0 : index
    %c3_15 = arith.constant 3 : index
    %19 = memref.load %arg2[%c0_14, %c3_15] : memref<2x4xf32, #tpu.memory_space<smem>>
    %20 = vector.broadcast %19 : f32 to vector<16x16xf32>
    %21 = arith.mulf %20, %7 : vector<16x16xf32>
    %22 = arith.addf %18, %21 : vector<16x16xf32>
    %c0_16 = arith.constant 0 : index
    %c0_17 = arith.constant 0 : index
    %c0_18 = arith.constant 0 : index
    %23 = vector.load %arg4[%c0_16, %c0_17, %c0_18] : memref<2x16x16xf32, #tpu.memory_space<vmem>>, vector<1x16x16xf32>
    %24 = vector.shape_cast %23 : vector<1x16x16xf32> to vector<16x16xf32>
    %25 = vector.shape_cast %22 : vector<16x16xf32> to vector<1x16x16xf32>
    tpu.vector_store %arg4[%c0_16, %c0_17, %c0_18], %25 {strides = array<i32>} : memref<2x16x16xf32, #tpu.memory_space<vmem>>, vector<1x16x16xf32>,
    %c1_19 = arith.constant 1 : index
    %c0_20 = arith.constant 0 : index
    %26 = memref.load %arg2[%c1_19, %c0_20] : memref<2x4xf32, #tpu.memory_space<smem>>
    %27 = vector.broadcast %26 : f32 to vector<16x16xf32>
    %28 = arith.mulf %27, %1 : vector<16x16xf32>
    %c1_21 = arith.constant 1 : index
    %c1_22 = arith.constant 1 : index
    %29 = memref.load %arg2[%c1_21, %c1_22] : memref<2x4xf32, #tpu.memory_space<smem>>
    %30 = vector.broadcast %29 : f32 to vector<16x16xf32>
    %31 = arith.mulf %30, %3 : vector<16x16xf32>
    %32 = arith.addf %28, %31 : vector<16x16xf32>
    %c1_23 = arith.constant 1 : index
    %c2_24 = arith.constant 2 : index
    %33 = memref.load %arg2[%c1_23, %c2_24] : memref<2x4xf32, #tpu.memory_space<smem>>
    %34 = vector.broadcast %33 : f32 to vector<16x16xf32>
    %35 = arith.mulf %34, %5 : vector<16x16xf32>
    %36 = arith.addf %32, %35 : vector<16x16xf32>
    %c1_25 = arith.constant 1 : index
    %c3_26 = arith.constant 3 : index
    %37 = memref.load %arg2[%c1_25, %c3_26] : memref<2x4xf32, #tpu.memory_space<smem>>
    %38 = vector.broadcast %37 : f32 to vector<16x16xf32>
    %39 = arith.mulf %38, %7 : vector<16x16xf32>
    %40 = arith.addf %36, %39 : vector<16x16xf32>
    %c1_27 = arith.constant 1 : index
    %c0_28 = arith.constant 0 : index
    %c0_29 = arith.constant 0 : index
    %41 = vector.load %arg4[%c1_27, %c0_28, %c0_29] : memref<2x16x16xf32, #tpu.memory_space<vmem>>, vector<1x16x16xf32>
    %42 = vector.shape_cast %41 : vector<1x16x16xf32> to vector<16x16xf32>
    %43 = vector.shape_cast %40 : vector<16x16xf32> to vector<1x16x16xf32>
    tpu.vector_store %arg4[%c1_27, %c0_28, %c0_29], %43 {strides = array<i32>} : memref<2x16x16xf32, #tpu.memory_space<vmem>>, vector<1x16x16xf32>,
    return
  }
  func.func @transform_0(%arg0: i32, %arg1: i32) -> (i32, i32) {
    %c0_i32 = arith.constant 0 : i32
    %c0_i32_0 = arith.constant 0 : i32
    %c0_i32_1 = arith.constant 0 : i32
    return %c0_i32, %c0_i32_0 : i32, i32
  }
  func.func @transform_1(%arg0: i32, %arg1: i32) -> (i32, i32, i32) {
    %c0_i32 = arith.constant 0 : i32
    %c0_i32_0 = arith.constant 0 : i32
    return %c0_i32, %arg0, %arg1 : i32, i32, i32
  }
  func.func @transform_2(%arg0: i32, %arg1: i32) -> (i32, i32, i32) {
    %c0_i32 = arith.constant 0 : i32
    %c0_i32_0 = arith.constant 0 : i32
    return %c0_i32, %arg0, %arg1 : i32, i32, i32
  }
}

</mosaic_0001>

<bundles_post_ra>
// kernel: tpu_custom_call.1
= control target key start
LH: loop header
LB: loop body
LE: loop exit
PB: predicated region body
PF: predicated region fallthrough
CT: control target
= control target key end

     0   :  { %7 = vsyncpa [#allocation5], 0  ;;  %s230_s0 = inlined_call_operand.hbm [shape: f32[2,4], index: 0, kind: input, shape index: {}]   ;;  %s231_s1 = inlined_call_operand.hbm [shape: f32[4,16,16], index: 1, kind: input, shape index: {}]   ;;  %s232_s2 = inlined_call_operand.hbm [shape: f32[2,16,16], index: 2, kind: output, shape index: {}]  }
   0x1   :  { %8 = vsyncpa [#allocation3], 0 }
   0x2   :  { %9 = vsyncpa [#allocation4], 0  ;;  %s182_s9 = smov [#allocation2]   ;;  %s183_s12 = smov [#allocation6]  }
   0x3   :  { %17 = dma.hbm_to_smem %s230_s0, 32, %s182_s9, [#allocation5]  }
   0x4   :  { %s23_s13 = sshll.u32 %s183_s12, 4  ;;  %s24_s13 = int_to_ptr.vmem [resolvable:$true] %s23_s13 }
   0x5   :  { %s144_s14 = scalar_lea.vmem %s24_s13, 1024  ;;  %p149_p1 = scmp.lt.s32.totalorder %s24_s13, %s24_s13 }
   0x6   :  { %p145_p0 = scmp.ne.s32.totalorder %s24_s13, %s144_s14  ;;  %p150_p2 = scmp.lt.s32.totalorder %s144_s14, %s144_s14 }
   0x8   :  { %p151_p3 = por %p150_p2, %p149_p1 }
   0xa   :  { %p152_p4 = pnand %p151_p3, %p145_p0 }
   0xc   :  { %155 = shalt.err (!%p152_p4)
}
   0xd   :  { %s184_s15 = smov 128   ;;  %s185_s16 = smov 8  }
   0xe   :  { %29 = dma.hbm_to_vmem [thread:$0]  %s231_s1, 1024, %s24_s13, [#allocation3], %s184_s15, %s184_s15, %s185_s16  }
   0xf   :  { %176 = dma.done.wait [#allocation5], 32  }
  0x10   :  { %177 = vsyncadd [#allocation5], 4294967264 }
  0x11   :  { %178 = dma.done.wait [#allocation3], 1024  }
  0x12   :  { %179 = vsyncadd [#allocation3], 4294966272 }
  0x13   :  { %36 = sfence }
  0x14   :  { %s48_s0 = sld [smem:[#allocation2]]  ;;  %v37_v0 = vld [vmem:[#allocation6] sm:$0xff]  ;;  %v38_v1 = vld [vmem:[#allocation6 + $0x8] sm:$0xff]  ;;  %v40_v2 = vld [vmem:[#allocation6 + $0x10] sm:$0xff]  ;;  %vm70_vm0 = vcmask 130048   ;;  %s186_s25 = smov [#allocation7]  }
  0x15   :  { %s116_s19 = sld [smem:[#allocation2 + $0x1]]  ;;  %v41_v3 = vld [vmem:[#allocation6 + $0x18] sm:$0xff]  ;;  %v43_v4 = vld [vmem:[#allocation6 + $0x20] sm:$0xff]  ;;  %v44_v6 = vld [vmem:[#allocation6 + $0x28] sm:$0xff]  ;;  %s103_s26 = sshll.u32 %s186_s25, 4  ;;  %s104_s26 = int_to_ptr.vmem [resolvable:$true] %s103_s26 }
  0x16   :  { %s117_s20 = sld [smem:[#allocation2 + $0x2]]  ;;  %v46_v7 = vld [vmem:[#allocation6 + $0x30] sm:$0xff]  ;;  %v47_v10 = vld [vmem:[#allocation6 + $0x38] sm:$0xff]  ;;  %s156_s27 = scalar_lea.vmem %s104_s26, 512 }
  0x17   :  { %s118_s21 = sld [smem:[#allocation2 + $0x3]]  ;;  %p157_p5 = scmp.ne.s32.totalorder %s104_s26, %s156_s27 }
  0x18   :  { %s211_s22 = sld [smem:[#allocation2 + $0x80]]  ;;  %p161_p6 = scmp.lt.s32.totalorder %s104_s26, %s104_s26 }
  0x19   :  { %s213_s23 = sld [smem:[#allocation2 + $0x81]]  ;;  %p162_p7 = scmp.lt.s32.totalorder %s156_s27, %s156_s27 }
  0x1a   :  { %v49_v5 = vstv %s48_s0  ;;  %s215_s1 = sld [smem:[#allocation2 + $0x82]] }
  0x1b   :  { %v50_v8 = vmul.f32 %v49_v5, %v37_v0  ;;  %v53_v9 = vstv %s116_s19  ;;  %v51_v11 = vmul.f32 %v49_v5, %v38_v1  ;;  %s122_s24 = sld [smem:[#allocation2 + $0x83]]  ;;  %p163_p8 = por %p162_p7, %p161_p6 }
  0x1c   :  { %v54_v12 = vmul.f32 %v53_v9, %v40_v2  ;;  %v59_v13 = vstv %s117_s20  ;;  %v55_v14 = vmul.f32 %v53_v9, %v41_v3 }
  0x1d   :  { %v60_v15 = vmul.f32 %v59_v13, %v43_v4  ;;  %v65_v16 = vstv %s118_s21  ;;  %v61_v17 = vmul.f32 %v59_v13, %v44_v6  ;;  %p164_p9 = pnand %p163_p8, %p157_p5 }
  0x1e   :  { %v56_v18 = vadd.f32 %v54_v12, %v50_v8  ;;  %v66_v19 = vmul.f32 %v65_v16, %v46_v7  ;;  %v57_v20 = vadd.f32 %v55_v14, %v51_v11  ;;  %v67_v21 = vmul.f32 %v65_v16, %v47_v10 }
  0x1f   :  { %v74_v22 = vstv %s211_s22  ;;  %v78_v23 = vstv %s213_s23 }
  0x20   :  { %v62_v24 = vadd.f32 %v60_v15, %v56_v18  ;;  %v63_v25 = vadd.f32 %v61_v17, %v57_v20  ;;  %v75_v26 = vmul.f32 %v74_v22, %v37_v0  ;;  %v79_v27 = vmul.f32 %v78_v23, %v40_v2 }
  0x21   :  { %v84_v28 = vstv %s215_s1  ;;  %v90_v29 = vstv %s122_s24  ;;  %v76_v30 = vmul.f32 %v74_v22, %v38_v1  ;;  %v80_v31 = vmul.f32 %v78_v23, %v41_v3 }
  0x22   :  { %v68_v32 = vadd.f32 %v66_v19, %v62_v24  ;;  %v69_v33 = vadd.f32 %v67_v21, %v63_v25  ;;  %v81_v34 = vadd.f32 %v79_v27, %v75_v26  ;;  %v85_v35 = vmul.f32 %v84_v28, %v43_v4 }
  0x23   :  { %v91_v36 = vmul.f32 %v90_v29, %v46_v7  ;;  %v82_v37 = vadd.f32 %v80_v31, %v76_v30  ;;  %v86_v38 = vmul.f32 %v84_v28, %v44_v6  ;;  %v92_v39 = vmul.f32 %v90_v29, %v47_v10 }
  0x24   :  { %71 = vst.msk [vmem:[#allocation7] sm:$0xff] %vm70_vm0, %v68_v32  ;;  %72 = vst.msk [vmem:[#allocation7 + $0x8] sm:$0xff] %vm70_vm0, %v69_v33  ;;  %v87_v40 = vadd.f32 %v85_v35, %v81_v34 }
  0x25   :  { %v88_v41 = vadd.f32 %v86_v38, %v82_v37 }
  0x26   :  { %v93_v42 = vadd.f32 %v91_v36, %v87_v40 }
  0x27   :  { %v94_v43 = vadd.f32 %v92_v39, %v88_v41 }
  0x28   :  { %96 = vst.msk [vmem:[#allocation7 + $0x10] sm:$0xff] %vm70_vm0, %v93_v42 }
  0x29   :  { %97 = vst.msk [vmem:[#allocation7 + $0x18] sm:$0xff] %vm70_vm0, %v94_v43 }
  0x2a   :  { %167 = shalt.err (!%p164_p9)
}
  0x2b   :  { %109 = dma.vmem_to_hbm [thread:$0]  %s104_s26, 512, %s232_s2, [#allocation4], %s184_s15, %s184_s15, %s185_s16  }
  0x2c   :  { %180 = dma.done.wait [#allocation4], 512  }
  0x2d   :  { %181 = vsyncadd [#allocation4], 4294966784 }
  0x2e   :  { %113 = vsyncpa [#allocation3], 1 }
  0x2f   :  { %114 = vsyncpa [#allocation4], 1 }
  0x30   :  { %115 = vsyncpa [#allocation5], 1 }

</bundles_post_ra>
